<compile_context>
chip_gen: v5e
topology: v5e:2x2
jax: 0.10.0
libtpu: 0.0.40
codegen_flags: <defaults>
</compile_context>

<pallas_src>
import functools
import math

import jax
import jax.numpy as jnp
from jax.experimental import pallas as pl
from jax.experimental.pallas import tpu as pltpu

EPS = 1e-5
_LANE = 128
_SUBLANE = 8


def _round_up(x, m):
    return ((x + m - 1) // m) * m


# --------------------------------------------------------------------------
# Phase 0: matmul + bias, write pre-BN H, accumulate global column statistics.
# --------------------------------------------------------------------------
def _phase0_kernel(x_ref, w_ref, b_ref, g_ref, beta_ref,
                   h_ref, scale_ref, shift_ref,
                   sum_acc, sq_acc, *, m_real, m_pad):
    i = pl.program_id(0)

    @pl.when(i == 0)
    def _():
        sum_acc[...] = jnp.zeros_like(sum_acc)
        sq_acc[...] = jnp.zeros_like(sq_acc)

    # Linear: (tm, Din) @ (Din, Dout) + bias  -> MXU, f32 accumulation.
    h = jnp.dot(x_ref[...], w_ref[...], preferred_element_type=jnp.float32)
    h = h + b_ref[...]            # b_ref is (1, Dout), broadcasts over rows
    h_ref[...] = h                # keep pre-BN activations for phase 1

    # Global (all-M) column sum / sum-of-squares.  Rows that only exist due to
    # M padding are masked out so the BatchNorm statistics stay exact.
    if m_real != m_pad:
        tm = h.shape[0]
        row = i * tm + jax.lax.broadcasted_iota(jnp.int32, (tm, 1), 0)
        valid = (row < m_real).astype(jnp.float32)
        hv = h * valid
    else:
        hv = h
    sum_acc[...] += jnp.sum(hv, axis=0, keepdims=True)
    sq_acc[...] += jnp.sum(hv * h, axis=0, keepdims=True)

    # Finalize: fold BN (biased batch var, eps inside rsqrt) + affine into a
    # single per-column scale/shift consumed by phase 1.
    @pl.when(i == pl.num_programs(0) - 1)
    def _():
        inv_m = 1.0 / float(m_real)
        mean = sum_acc[...] * inv_m
        var = jnp.maximum(sq_acc[...] * inv_m - mean * mean, 0.0)
        inv_std = jax.lax.rsqrt(var + EPS)
        scale = g_ref[...] * inv_std
        scale_ref[...] = scale
        shift_ref[...] = beta_ref[...] - mean * scale


# --------------------------------------------------------------------------
# Phase 1: elementwise normalize + affine + tanh (parallel over M tiles).
# --------------------------------------------------------------------------
def _phase1_kernel(h_ref, scale_ref, shift_ref, o_ref):
    o_ref[...] = jnp.tanh(h_ref[...] * scale_ref[...] + shift_ref[...])


def _choose_tile_m(m8, d_in_p, d_out_p, budget_bytes=24 * 1024 * 1024):
    """Largest M tile (multiple of 8) whose double-buffered working set fits a
    conservative VMEM budget (safe on v5e/v6e and on v7x's 64 MiB VMEM)."""
    fixed = 2 * d_in_p * d_out_p * 4 + 16 * d_out_p * 4  # W (dbl-buf) + small vecs
    tm = max(_SUBLANE, (min(m8, 1024) // _SUBLANE) * _SUBLANE)
    while tm > _SUBLANE and fixed + 2 * tm * (d_in_p + d_out_p) * 4 > budget_bytes:
        tm = max(_SUBLANE, (tm // 2 // _SUBLANE) * _SUBLANE)
    return tm


def unitcoder_forward(x, w, b, gamma, beta):
    """x: (N, T, D_in) or (M, D_in). Returns same leading shape with D_out last."""
    orig_shape = x.shape
    x2 = x.reshape(-1, x.shape[-1]) if x.ndim > 2 else x
    m, d_in = x2.shape
    d_out = w.shape[1]

    # Pad feature dims to lane multiples, rows to a multiple of the M tile.
    d_in_p = _round_up(d_in, _LANE)
    d_out_p = _round_up(d_out, _LANE)
    tm = _choose_tile_m(_round_up(m, _SUBLANE), d_in_p, d_out_p)
    m_pad = _round_up(m, tm)
    mt = m_pad // tm

    f32 = jnp.float32
    x2p = jnp.pad(x2.astype(f32), ((0, m_pad - m), (0, d_in_p - d_in)))
    w_p = jnp.pad(w.astype(f32), ((0, d_in_p - d_in), (0, d_out_p - d_out)))
    b_p = jnp.pad(b.astype(f32), (0, d_out_p - d_out)).reshape(1, d_out_p)
    g_p = jnp.pad(gamma.astype(f32), (0, d_out_p - d_out)).reshape(1, d_out_p)
    beta_p = jnp.pad(beta.astype(f32), (0, d_out_p - d_out)).reshape(1, d_out_p)

    small_spec = pl.BlockSpec((1, d_out_p), lambda i: (0, 0))
    row_in_spec = pl.BlockSpec((tm, d_in_p), lambda i: (i, 0))
    row_out_spec = pl.BlockSpec((tm, d_out_p), lambda i: (i, 0))

    vmem_needed = (2 * tm * (d_in_p + d_out_p) * 4
                   + 2 * d_in_p * d_out_p * 4
                   + 24 * d_out_p * 4)
    vmem_limit = int(min(56 * 1024 * 1024,
                         max(2 * vmem_needed, 16 * 1024 * 1024)))

    # ---------------- phase 0: matmul + bias + global BN stats ----------------
    h_pre, scale, shift = pl.pallas_call(
        functools.partial(_phase0_kernel, m_real=m, m_pad=m_pad),
        out_shape=(
            jax.ShapeDtypeStruct((m_pad, d_out_p), f32),
            jax.ShapeDtypeStruct((1, d_out_p), f32),
            jax.ShapeDtypeStruct((1, d_out_p), f32),
        ),
        grid_spec=pltpu.PrefetchScalarGridSpec(
            num_scalar_prefetch=0,
            grid=(mt,),
            in_specs=[
                row_in_spec,                                   # X tile
                pl.BlockSpec((d_in_p, d_out_p), lambda i: (0, 0)),  # W (resident)
                small_spec, small_spec, small_spec,            # b, gamma, beta
            ],
            out_specs=(
                row_out_spec,                                  # pre-BN H tile
                small_spec, small_spec,                        # scale, shift
            ),
            scratch_shapes=[
                pltpu.VMEM((1, d_out_p), f32),                 # column sum
                pltpu.VMEM((1, d_out_p), f32),                 # column sum of squares
            ],
        ),
        compiler_params=pltpu.CompilerParams(
            dimension_semantics=("arbitrary",),                # stats accumulation
            vmem_limit_bytes=vmem_limit,
        ),
        cost_estimate=pl.CostEstimate(
            flops=2 * m_pad * d_in_p * d_out_p,
            transcendentals=d_out_p,
            bytes_accessed=4 * (m_pad * d_in_p + d_in_p * d_out_p + m_pad * d_out_p),
        ),
    )(x2p, w_p, b_p, g_p, beta_p)

    # ---------------- phase 1: normalize + affine + tanh ----------------------
    out = pl.pallas_call(
        _phase1_kernel,
        out_shape=jax.ShapeDtypeStruct((m_pad, d_out_p), f32),
        grid_spec=pltpu.PrefetchScalarGridSpec(
            num_scalar_prefetch=0,
            grid=(mt,),
            in_specs=[row_out_spec, small_spec, small_spec],
            out_specs=row_out_spec,
        ),
        compiler_params=pltpu.CompilerParams(
            dimension_semantics=("parallel",),                 # shards across TCs on v7x
            vmem_limit_bytes=vmem_limit,
        ),
        cost_estimate=pl.CostEstimate(
            flops=2 * m_pad * d_out_p,
            transcendentals=m_pad * d_out_p,
            bytes_accessed=4 * 2 * m_pad * d_out_p,
        ),
    )(h_pre, scale, shift)

    out = out[:m, :d_out]
    if x.ndim > 2:
        out = out.reshape(*orig_shape[:-1], d_out)
    return out


def init_unitcoder_params(key, in_dim, out_dim):
    """Deterministic init matching the PyTorch module: xavier_uniform_ Linear
    weight, zero bias, BN gamma=1 / beta=0."""
    limit = math.sqrt(6.0 / (in_dim + out_dim))
    # PyTorch weight is (out, in); we store the transpose (in, out) for X @ W.
    w = jax.random.uniform(
        key, (in_dim, out_dim), minval=-limit, maxval=limit, dtype=jnp.float32
    )
    b = jnp.zeros((out_dim,), dtype=jnp.float32)
    gamma = jnp.ones((out_dim,), dtype=jnp.float32)
    beta = jnp.zeros((out_dim,), dtype=jnp.float32)
    return w, b, gamma, beta


# TODO(synk): BatchNorm1d running_mean / running_var buffers are not updated
# (only training-mode forward activations are produced).

if __name__ == "__main__":
    key = jax.random.PRNGKey(0)
    k_x, k_w = jax.random.split(key)

    N, T, D_IN, D_OUT = 2, 8, 32, 32
    x = jax.random.normal(k_x, (N, T, D_IN), dtype=jnp.float32)
    w, b, gamma, beta = init_unitcoder_params(k_w, D_IN, D_OUT)

    out = unitcoder_forward(x, w, b, gamma, beta)
    jax.block_until_ready(out)

    # sanity check against a pure-JAX reference of the same semantics
    x2 = x.reshape(-1, D_IN)
    h_ref = x2 @ w + b
    mu = h_ref.mean(axis=0, keepdims=True)
    var = ((h_ref - mu) ** 2).mean(axis=0, keepdims=True)
    ref = jnp.tanh((h_ref - mu) / jnp.sqrt(var + EPS) * gamma + beta)
    ref = ref.reshape(N, T, D_OUT)
    assert out.shape == (N, T, D_OUT)
    assert jnp.max(jnp.abs(out - ref)) < 1e-4

    print("KERNEL_OK")
</pallas_src>

<mosaic_0001>
module attributes {stable_mosaic.version = 11 : i64} {
  func.func @_phase0_kernel(%arg0: i32, %arg1: memref<16x128xf32, #tpu.memory_space<vmem>>, %arg2: memref<128x128xf32, #tpu.memory_space<vmem>>, %arg3: memref<1x128xf32, #tpu.memory_space<vmem>>, %arg4: memref<1x128xf32, #tpu.memory_space<vmem>>, %arg5: memref<1x128xf32, #tpu.memory_space<vmem>>, %arg6: memref<16x128xf32, #tpu.memory_space<vmem>>, %arg7: memref<1x128xf32, #tpu.memory_space<vmem>>, %arg8: memref<1x128xf32, #tpu.memory_space<vmem>>, %arg9: memref<1x128xf32, #tpu.memory_space<vmem>>, %arg10: memref<1x128xf32, #tpu.memory_space<vmem>>) attributes {dimension_semantics = [#tpu.dimension_semantics<arbitrary>], iteration_bounds = array<i64: 1>, scalar_prefetch = 0 : i64, scratch_operands = 2 : i64, tpu.core_type = #tpu.core_type<tc>, window_params = [{transform_indices = @transform_0, window_bounds = array<i64: 16, 128>}, {pipeline_mode = #tpu.pipeline_mode<synchronous>, transform_indices = @transform_1, window_bounds = array<i64: 128, 128>}, {pipeline_mode = #tpu.pipeline_mode<synchronous>, transform_indices = @transform_2, window_bounds = array<i64: 1, 128>}, {pipeline_mode = #tpu.pipeline_mode<synchronous>, transform_indices = @transform_3, window_bounds = array<i64: 1, 128>}, {pipeline_mode = #tpu.pipeline_mode<synchronous>, transform_indices = @transform_4, window_bounds = array<i64: 1, 128>}, {transform_indices = @transform_5, window_bounds = array<i64: 16, 128>}, {pipeline_mode = #tpu.pipeline_mode<synchronous>, transform_indices = @transform_6, window_bounds = array<i64: 1, 128>}, {pipeline_mode = #tpu.pipeline_mode<synchronous>, transform_indices = @transform_7, window_bounds = array<i64: 1, 128>}]} {
    %c0_i32 = arith.constant 0 : i32
    %0 = arith.cmpi eq, %arg0, %c0_i32 : i32
    %1 = arith.extui %0 : i1 to i32
    %c0_i32_0 = arith.constant 0 : i32
    %2 = arith.cmpi ne, %1, %c0_i32_0 : i32
    scf.if %2 {
      %cst_20 = arith.constant 0.000000e+00 : f32
      %24 = vector.broadcast %cst_20 : f32 to vector<1x128xf32>
      %c0_21 = arith.constant 0 : index
      %c0_22 = arith.constant 0 : index
      %25 = vector.load %arg9[%c0_21, %c0_22] : memref<1x128xf32, #tpu.memory_space<vmem>>, vector<1x128xf32>
      tpu.vector_store %arg9[%c0_21, %c0_22], %24 {strides = array<i32>} : memref<1x128xf32, #tpu.memory_space<vmem>>, vector<1x128xf32>,
      %cst_23 = arith.constant 0.000000e+00 : f32
      %26 = vector.broadcast %cst_23 : f32 to vector<1x128xf32>
      %c0_24 = arith.constant 0 : index
      %c0_25 = arith.constant 0 : index
      %27 = vector.load %arg10[%c0_24, %c0_25] : memref<1x128xf32, #tpu.memory_space<vmem>>, vector<1x128xf32>
      tpu.vector_store %arg10[%c0_24, %c0_25], %26 {strides = array<i32>} : memref<1x128xf32, #tpu.memory_space<vmem>>, vector<1x128xf32>,
    } else {
    }
    %c0 = arith.constant 0 : index
    %c0_1 = arith.constant 0 : index
    %3 = vector.load %arg1[%c0, %c0_1] : memref<16x128xf32, #tpu.memory_space<vmem>>, vector<16x128xf32>
    %c0_2 = arith.constant 0 : index
    %c0_3 = arith.constant 0 : index
    %4 = vector.load %arg2[%c0_2, %c0_3] : memref<128x128xf32, #tpu.memory_space<vmem>>, vector<128x128xf32>
    %cst = arith.constant dense<0.000000e+00> : vector<16x128xf32>
    %5 = tpu.matmul %3, %4, %cst {dimension_numbers = #tpu.dot_dimension_numbers<[1], [0], [0], [1], [0, 0, 1, 1], [], []>} : vector<16x128xf32>, vector<128x128xf32>, vector<16x128xf32> -> vector<16x128xf32>
    %c0_4 = arith.constant 0 : index
    %c0_5 = arith.constant 0 : index
    %6 = vector.load %arg3[%c0_4, %c0_5] : memref<1x128xf32, #tpu.memory_space<vmem>>, vector<1x128xf32>
    %7 = vector.broadcast %6 : vector<1x128xf32> to vector<16x128xf32>
    %8 = arith.addf %5, %7 : vector<16x128xf32>
    %c0_6 = arith.constant 0 : index
    %c0_7 = arith.constant 0 : index
    %9 = vector.load %arg6[%c0_6, %c0_7] : memref<16x128xf32, #tpu.memory_space<vmem>>, vector<16x128xf32>
    tpu.vector_store %arg6[%c0_6, %c0_7], %8 {strides = array<i32>} : memref<16x128xf32, #tpu.memory_space<vmem>>, vector<16x128xf32>,
    %c0_8 = arith.constant 0 : index
    %c0_9 = arith.constant 0 : index
    %10 = vector.load %arg9[%c0_8, %c0_9] : memref<1x128xf32, #tpu.memory_space<vmem>>, vector<1x128xf32>
    %cst_10 = arith.constant dense<0.000000e+00> : vector<128xf32>
    %11 = vector.multi_reduction <add>, %8, %cst_10 [0] : vector<16x128xf32> to vector<128xf32>
    %12 = vector.shape_cast %11 : vector<128xf32> to vector<1x128xf32>
    %13 = arith.addf %10, %12 : vector<1x128xf32>
    %c0_11 = arith.constant 0 : index
    %c0_12 = arith.constant 0 : index
    %14 = vector.load %arg9[%c0_11, %c0_12] : memref<1x128xf32, #tpu.memory_space<vmem>>, vector<1x128xf32>
    tpu.vector_store %arg9[%c0_11, %c0_12], %13 {strides = array<i32>} : memref<1x128xf32, #tpu.memory_space<vmem>>, vector<1x128xf32>,
    %c0_13 = arith.constant 0 : index
    %c0_14 = arith.constant 0 : index
    %15 = vector.load %arg10[%c0_13, %c0_14] : memref<1x128xf32, #tpu.memory_space<vmem>>, vector<1x128xf32>
    %16 = arith.mulf %8, %8 : vector<16x128xf32>
    %cst_15 = arith.constant dense<0.000000e+00> : vector<128xf32>
    %17 = vector.multi_reduction <add>, %16, %cst_15 [0] : vector<16x128xf32> to vector<128xf32>
    %18 = vector.shape_cast %17 : vector<128xf32> to vector<1x128xf32>
    %19 = arith.addf %15, %18 : vector<1x128xf32>
    %c0_16 = arith.constant 0 : index
    %c0_17 = arith.constant 0 : index
    %20 = vector.load %arg10[%c0_16, %c0_17] : memref<1x128xf32, #tpu.memory_space<vmem>>, vector<1x128xf32>
    tpu.vector_store %arg10[%c0_16, %c0_17], %19 {strides = array<i32>} : memref<1x128xf32, #tpu.memory_space<vmem>>, vector<1x128xf32>,
    %c0_i32_18 = arith.constant 0 : i32
    %21 = arith.cmpi eq, %arg0, %c0_i32_18 : i32
    %22 = arith.extui %21 : i1 to i32
    %c0_i32_19 = arith.constant 0 : i32
    %23 = arith.cmpi ne, %22, %c0_i32_19 : i32
    scf.if %23 {
      %c0_20 = arith.constant 0 : index
      %c0_21 = arith.constant 0 : index
      %24 = vector.load %arg9[%c0_20, %c0_21] : memref<1x128xf32, #tpu.memory_space<vmem>>, vector<1x128xf32>
      %cst_22 = arith.constant 6.250000e-02 : f32
      %25 = vector.broadcast %cst_22 : f32 to vector<1x128xf32>
      %26 = arith.mulf %24, %25 : vector<1x128xf32>
      %c0_23 = arith.constant 0 : index
      %c0_24 = arith.constant 0 : index
      %27 = vector.load %arg10[%c0_23, %c0_24] : memref<1x128xf32, #tpu.memory_space<vmem>>, vector<1x128xf32>
      %cst_25 = arith.constant 6.250000e-02 : f32
      %28 = vector.broadcast %cst_25 : f32 to vector<1x128xf32>
      %29 = arith.mulf %27, %28 : vector<1x128xf32>
      %30 = arith.mulf %26, %26 : vector<1x128xf32>
      %31 = arith.subf %29, %30 : vector<1x128xf32>
      %cst_26 = arith.constant 0.000000e+00 : f32
      %32 = vector.broadcast %cst_26 : f32 to vector<1x128xf32>
      %33 = arith.maximumf %31, %32 : vector<1x128xf32>
      %cst_27 = arith.constant 9.99999974E-6 : f32
      %34 = vector.broadcast %cst_27 : f32 to vector<1x128xf32>
      %35 = arith.addf %33, %34 : vector<1x128xf32>
      %36 = math.rsqrt %35 : vector<1x128xf32>
      %c0_28 = arith.constant 0 : index
      %c0_29 = arith.constant 0 : index
      %37 = vector.load %arg4[%c0_28, %c0_29] : memref<1x128xf32, #tpu.memory_space<vmem>>, vector<1x128xf32>
      %38 = arith.mulf %37, %36 : vector<1x128xf32>
      %c0_30 = arith.constant 0 : index
      %c0_31 = arith.constant 0 : index
      %39 = vector.load %arg7[%c0_30, %c0_31] : memref<1x128xf32, #tpu.memory_space<vmem>>, vector<1x128xf32>
      tpu.vector_store %arg7[%c0_30, %c0_31], %38 {strides = array<i32>} : memref<1x128xf32, #tpu.memory_space<vmem>>, vector<1x128xf32>,
      %c0_32 = arith.constant 0 : index
      %c0_33 = arith.constant 0 : index
      %40 = vector.load %arg5[%c0_32, %c0_33] : memref<1x128xf32, #tpu.memory_space<vmem>>, vector<1x128xf32>
      %41 = arith.mulf %26, %38 : vector<1x128xf32>
      %42 = arith.subf %40, %41 : vector<1x128xf32>
      %c0_34 = arith.constant 0 : index
      %c0_35 = arith.constant 0 : index
      %43 = vector.load %arg8[%c0_34, %c0_35] : memref<1x128xf32, #tpu.memory_space<vmem>>, vector<1x128xf32>
      tpu.vector_store %arg8[%c0_34, %c0_35], %42 {strides = array<i32>} : memref<1x128xf32, #tpu.memory_space<vmem>>, vector<1x128xf32>,
    } else {
    }
    return
  }
  func.func @transform_0(%arg0: i32) -> (i32, i32) {
    %c0_i32 = arith.constant 0 : i32
    %c0_i32_0 = arith.constant 0 : i32
    return %arg0, %c0_i32 : i32, i32
  }
  func.func @transform_1(%arg0: i32) -> (i32, i32) {
    %c0_i32 = arith.constant 0 : i32
    %c0_i32_0 = arith.constant 0 : i32
    %c0_i32_1 = arith.constant 0 : i32
    return %c0_i32, %c0_i32_0 : i32, i32
  }
  func.func @transform_2(%arg0: i32) -> (i32, i32) {
    %c0_i32 = arith.constant 0 : i32
    %c0_i32_0 = arith.constant 0 : i32
    %c0_i32_1 = arith.constant 0 : i32
    return %c0_i32, %c0_i32_0 : i32, i32
  }
  func.func @transform_3(%arg0: i32) -> (i32, i32) {
    %c0_i32 = arith.constant 0 : i32
    %c0_i32_0 = arith.constant 0 : i32
    %c0_i32_1 = arith.constant 0 : i32
    return %c0_i32, %c0_i32_0 : i32, i32
  }
  func.func @transform_4(%arg0: i32) -> (i32, i32) {
    %c0_i32 = arith.constant 0 : i32
    %c0_i32_0 = arith.constant 0 : i32
    %c0_i32_1 = arith.constant 0 : i32
    return %c0_i32, %c0_i32_0 : i32, i32
  }
  func.func @transform_5(%arg0: i32) -> (i32, i32) {
    %c0_i32 = arith.constant 0 : i32
    %c0_i32_0 = arith.constant 0 : i32
    return %arg0, %c0_i32 : i32, i32
  }
  func.func @transform_6(%arg0: i32) -> (i32, i32) {
    %c0_i32 = arith.constant 0 : i32
    %c0_i32_0 = arith.constant 0 : i32
    %c0_i32_1 = arith.constant 0 : i32
    return %c0_i32, %c0_i32_0 : i32, i32
  }
  func.func @transform_7(%arg0: i32) -> (i32, i32) {
    %c0_i32 = arith.constant 0 : i32
    %c0_i32_0 = arith.constant 0 : i32
    %c0_i32_1 = arith.constant 0 : i32
    return %c0_i32, %c0_i32_0 : i32, i32
  }
}

</mosaic_0001>

<bundles_post_ra>
// kernel: tpu_custom_call.1
= control target key start
LH: loop header
LB: loop body
LE: loop exit
PB: predicated region body
PF: predicated region fallthrough
CT: control target
= control target key end

     0   :  { %13 = vsyncpa [#allocation5], 0  ;;  %s447_s0 = inlined_call_operand.hbm [shape: f32[16,128], index: 0, kind: input, shape index: {}]   ;;  %s448_s1 = inlined_call_operand.hbm [shape: f32[128,128], index: 1, kind: input, shape index: {}]   ;;  %s449_s2 = inlined_call_operand.vmem [shape: f32[1,128], index: 2, kind: input, shape index: {}]   ;;  %s450_s3 = inlined_call_operand.vmem [shape: f32[1,128], index: 3, kind: input, shape index: {}]   ;;  %s451_s4 = inlined_call_operand.vmem [shape: f32[1,128], index: 4, kind: input, shape index: {}]   ;;  %s452_s5 = inlined_call_operand.hbm [shape: f32[16,128], index: 5, kind: output, shape index: {0}]   ;;  %s453_s6 = inlined_call_operand.hbm [shape: f32[1,128], index: 6, kind: output, shape index: {1}]   ;;  %s454_s7 = inlined_call_operand.hbm [shape: f32[1,128], index: 7, kind: output, shape index: {2}]  }
   0x1   :  { %14 = vsyncpa [#allocation8], 0 }
   0x2   :  { %15 = vsyncpa [#allocation6], 0 }
   0x3   :  { %16 = vsyncpa [#allocation11], 0  ;;  %s21_s26 = sshll.u32 %s447_s0, 4  ;;  %s366_s27 = smov [#allocation4]   ;;  %s22_s26 = int_to_ptr.hbm [resolvable:$true] %s21_s26 }
   0x4   :  { %s23_s28 = sshll.u32 %s366_s27, 4  ;;  %s34_s8 = sshll.u32 %s448_s1, 4  ;;  %s24_s28 = int_to_ptr.vmem [resolvable:$true] %s23_s28  ;;  %s35_s8 = int_to_ptr.hbm [resolvable:$true] %s34_s8 }
   0x5   :  { %s367_s9 = smov 128   ;;  %s368_s10 = smov 8  }
   0x6   :  { %29 = dma.hbm_to_vmem [thread:$0]  %s22_s26, 256, %s24_s28, [#allocation5], %s367_s9, %s367_s9, %s368_s10  }
   0x7   :  { %s369_s11 = smov [#allocation7]  }
   0x8   :  { %s36_s12 = sshll.u32 %s369_s11, 4  ;;  %s37_s12 = int_to_ptr.vmem [resolvable:$true] %s36_s12 }
   0x9   :  { %42 = dma.hbm_to_vmem [thread:$0]  %s35_s8, 2048, %s37_s12, [#allocation8], %s367_s9, %s367_s9, %s368_s10  }
   0xa   :  { %358 = dma.done.wait [#allocation5], 256  }
   0xb   :  { %359 = vsyncadd [#allocation5], 4294967040 }
   0xc   :  { %360 = dma.done.wait [#allocation8], 2048  }
   0xd   :  { %361 = vsyncadd [#allocation8], 4294965248  ;;  %v80_v0 = vld [vmem:[#allocation7 + $0x78] sm:$0xff]  ;;  %v79_v1 = vld [vmem:[#allocation7 + $0x70] sm:$0xff]  ;;  %v370_v18 = vmov 0.0   ;;  %s371_s13 = smov [#allocation9]  }
   0xe   :  { %85 = vmatpush.msra.mxu0 %v80_v0  ;;  %211 = vmatpush.msra.mxu1 %v80_v0  ;;  %v78_v2 = vld [vmem:[#allocation7 + $0x68] sm:$0xff]  ;;  %v77_v3 = vld [vmem:[#allocation7 + $0x60] sm:$0xff]  ;;  %v76_v4 = vld [vmem:[#allocation7 + $0x58] sm:$0xff]  ;;  %61 = vst [vmem:[#allocation2] sm:$0x1] %v370_v18  ;;  %s164_s14 = sshll.u32 %s371_s13, 4  ;;  %s165_s14 = int_to_ptr.vmem [resolvable:$true] %s164_s14 }
   0xf   :  { %v75_v5 = vld [vmem:[#allocation7 + $0x50] sm:$0xff]  ;;  %v74_v6 = vld [vmem:[#allocation7 + $0x48] sm:$0xff]  ;;  %v73_v7 = vld [vmem:[#allocation7 + $0x40] sm:$0xff]  ;;  %62 = vst [vmem:[#allocation3] sm:$0x1] %v370_v18  ;;  %s166_s17 = sshll.u32 %s452_s5, 4  ;;  %s167_s17 = int_to_ptr.hbm [resolvable:$true] %s166_s17 }
  0x10   :  { %86 = vmatpush.msra.mxu0 %v79_v1  ;;  %212 = vmatpush.msra.mxu1 %v79_v1  ;;  %v72_v8 = vld [vmem:[#allocation7 + $0x38] sm:$0xff]  ;;  %v71_v9 = vld [vmem:[#allocation7 + $0x30] sm:$0xff]  ;;  %v70_v10 = vld [vmem:[#allocation7 + $0x28] sm:$0xff]  ;;  %s372_s18 = smov [#allocation10]   ;;  %s180_s22 = sshll.u32 %s453_s6, 4  ;;  %s181_s22 = int_to_ptr.hbm [resolvable:$true] %s180_s22 }
  0x11   :  { %v69_v11 = vld [vmem:[#allocation7 + $0x20] sm:$0xff]  ;;  %v68_v12 = vld [vmem:[#allocation7 + $0x18] sm:$0xff]  ;;  %v67_v13 = vld [vmem:[#allocation7 + $0x10] sm:$0xff]  ;;  %s178_s19 = sshll.u32 %s372_s18, 4  ;;  %s373_s25 = smov [#allocation12]   ;;  %s179_s19 = int_to_ptr.vmem [resolvable:$true] %s178_s19 }
  0x12   :  { %87 = vmatpush.msra.mxu0 %v78_v2  ;;  %213 = vmatpush.msra.mxu1 %v78_v2  ;;  %v66_v14 = vld [vmem:[#allocation7 + $0x8] sm:$0xff]  ;;  %v65_v15 = vld [vmem:[#allocation7] sm:$0xff]  ;;  %v63_v16 = vld [vmem:[#allocation4] sm:$0xff]  ;;  %s189_s26 = sshll.u32 %s373_s25, 4  ;;  %s190_s26 = int_to_ptr.vmem [resolvable:$true] %s189_s26 }
  0x13   :  { %v64_v17 = vld [vmem:[#allocation4 + $0x8] sm:$0xff]  ;;  %v235_v19 = vld [vmem:[%s449_s2] ss:$0 sm:$0xff] }
  0x14   :  { %88 = vmatpush.msra.mxu0 %v77_v3  ;;  %214 = vmatpush.msra.mxu1 %v77_v3  ;;  %v153_v58 = vld [vmem:[%s450_s3] sm:$0x1]  ;;  %s191_s3 = sshll.u32 %s454_s7, 4  ;;  %s192_s3 = int_to_ptr.hbm [resolvable:$true] %s191_s3 }
  0x15   :  { %v110_v37 = vld [vmem:[#allocation2] sm:$0x1] }
  0x16   :  { %89 = vmatpush.msra.mxu0 %v76_v4  ;;  %215 = vmatpush.msra.mxu1 %v76_v4  ;;  %v120_v40 = vld [vmem:[#allocation3] sm:$0x1]  ;;  %v156_v61 = vld [vmem:[%s451_s4] sm:$0x1] }
  0x18   :  { %90 = vmatpush.msra.mxu0 %v75_v5  ;;  %216 = vmatpush.msra.mxu1 %v75_v5 }
  0x1a   :  { %91 = vmatpush.msra.mxu0 %v74_v6  ;;  %217 = vmatpush.msra.mxu1 %v74_v6 }
  0x1c   :  { %92 = vmatpush.msra.mxu0 %v73_v7  ;;  %218 = vmatpush.msra.mxu1 %v73_v7 }
  0x1e   :  { %93 = vmatpush.msra.mxu0 %v72_v8  ;;  %219 = vmatpush.msra.mxu1 %v72_v8 }
  0x20   :  { %94 = vmatpush.msra.mxu0 %v71_v9  ;;  %220 = vmatpush.msra.mxu1 %v71_v9 }
  0x22   :  { %95 = vmatpush.msra.mxu0 %v70_v10  ;;  %221 = vmatpush.msra.mxu1 %v70_v10 }
  0x24   :  { %96 = vmatpush.msra.mxu0 %v69_v11  ;;  %222 = vmatpush.msra.mxu1 %v69_v11 }
  0x26   :  { %97 = vmatpush.msra.mxu0 %v68_v12  ;;  %223 = vmatpush.msra.mxu1 %v68_v12 }
  0x28   :  { %98 = vmatpush.msra.mxu0 %v67_v13  ;;  %224 = vmatpush.msra.mxu1 %v67_v13 }
  0x2a   :  { %99 = vmatpush.msra.mxu0 %v66_v14  ;;  %225 = vmatpush.msra.mxu1 %v66_v14 }
  0x2c   :  { %100 = vmatpush.msra.mxu0 %v65_v15  ;;  %226 = vmatpush.msra.mxu1 %v65_v15 }
  0x2d   :  { %101 = vmatmul.f32.vlgmr.msra.gmra.mxu0 %v63_v16  ;;  %104 = vmatmul.f32.vlgmr.msra.gmra.mxu1 %v64_v17 }
  0xaa   :  { %v102_v20 = vpop.f32.mrf.mxu0  ;;  %v105_v21 = vpop.f32.mrf.mxu1 }
  0xab   :  { %v103_v22 = vadd.f32 %v235_v19, %v102_v20  ;;  %v106_v23 = vadd.f32 %v235_v19, %v105_v21 }
  0xad   :  { %108 = vst [vmem:[#allocation9] sm:$0xff] %v103_v22  ;;  %v121_v24 = vmul.f32 %v103_v22, %v103_v22  ;;  %v111_v25 = vadd.f32 %v106_v23, %v103_v22  ;;  %v122_v26 = vmul.f32 %v106_v23, %v106_v23 }
  0xae   :  { %109 = vst [vmem:[#allocation9 + $0x8] sm:$0xff] %v106_v23 }
  0xaf   :  { %v112_v27 = vrot.slane %v111_v25, 4  ;;  %v123_v28 = vadd.f32 %v122_v26, %v121_v24  ;;  %172 = dma.vmem_to_hbm [thread:$0]  %s165_s14, 256, %s167_s17, [#allocation6], %s367_s9, %s367_s9, %s368_s10  }
  0xb1   :  { %v113_v29 = vadd.f32 %v112_v27, %v111_v25  ;;  %v124_v30 = vrot.slane %v123_v28, 4 }
  0xb3   :  { %v114_v31 = vrot.slane %v113_v29, 2  ;;  %v125_v32 = vadd.f32 %v124_v30, %v123_v28 }
  0xb5   :  { %v115_v33 = vadd.f32 %v114_v31, %v113_v29  ;;  %v126_v34 = vrot.slane %v125_v32, 2 }
  0xb7   :  { %v116_v35 = vrot.slane %v115_v33, 1  ;;  %v127_v36 = vadd.f32 %v126_v34, %v125_v32 }
  0xb9   :  { %v117_v38 = vadd.f32 %v116_v35, %v115_v33  ;;  %v128_v39 = vrot.slane %v127_v36, 1 }
  0xbb   :  { %v118_v41 = vadd.f32 %v117_v38, %v110_v37  ;;  %v129_v42 = vadd.f32 %v128_v39, %v127_v36 }
  0xbd   :  { %119 = vst [vmem:[#allocation2] sm:$0x1] %v118_v41  ;;  %v130_v43 = vadd.f32 %v129_v42, %v120_v40 }
  0xbf   :  { %131 = vst [vmem:[#allocation3] sm:$0x1] %v130_v43 }
  0xc4   :  { %v135_v44 = vld [vmem:[#allocation2] sm:$0x1] }
  0xc5   :  { %v136_v45 = vmul.f32 0.0625, %v135_v44 }
  0xc6   :  { %v137_v46 = vld [vmem:[#allocation3] sm:$0x1] }
  0xc7   :  { %v138_v47 = vmul.f32 0.0625, %v137_v46  ;;  %v139_v48 = vmul.f32 %v136_v45, %v136_v45 }
  0xc9   :  { %v140_v49 = vsub.f32 %v138_v47, %v139_v48 }
  0xcb   :  { %v141_v50 = vmax.f32 %v140_v49, 0.0 }
  0xcd   :  { %v142_v51 = vadd.f32 1e-05, %v141_v50 }
  0xcf   :  { %236 = vrsqrt.f32 %v142_v51  ;;  %vm149_vm1 = vweird.f32 %v142_v51 }
  0xd5   :  { %v237_v52 = vpop.eup %236 }
  0xd6   :  { %v144_v53 = vmul.f32 %v237_v52, %v142_v51  ;;  %vm150_vm0 = vweird.f32 %v237_v52 }
  0xd7   :  { %vm151_vm2 = vmor %vm149_vm1, %vm150_vm0 }
  0xd8   :  { %v145_v54 = vmul.f32 %v237_v52, %v144_v53 }
  0xda   :  { %v146_v55 = vmul.f32 0.5, %v145_v54 }
  0xdc   :  { %v147_v56 = vsub.f32 1.5, %v146_v55 }
  0xde   :  { %v148_v57 = vmul.f32 %v237_v52, %v147_v56 }
  0xe0   :  { %v152_v59 = vsel %vm151_vm2, %v237_v52, %v148_v57 }
  0xe1   :  { %v154_v60 = vmul.f32 %v153_v58, %v152_v59 }
  0xe3   :  { %155 = vst [vmem:[#allocation10] sm:$0x1] %v154_v60  ;;  %v157_v62 = vmul.f32 %v154_v60, %v136_v45 }
  0xe4   :  { %183 = dma.vmem_to_hbm [thread:$0]  %s179_s19, 16, %s181_s22, [#allocation11]  }
  0xe5   :  { %v158_v63 = vsub.f32 %v156_v61, %v157_v62 }
  0xe7   :  { %159 = vst [vmem:[#allocation12] sm:$0x1] %v158_v63 }
  0xe8   :  { %194 = dma.vmem_to_hbm [thread:$0]  %s190_s26, 16, %s192_s3, [#allocation11]  }
  0xe9   :  { %362 = dma.done.wait [#allocation6], 256  }
  0xea   :  { %363 = vsyncadd [#allocation6], 4294967040 }
  0xeb   :  { %364 = dma.done.wait [#allocation11], 32  }
  0xec   :  { %365 = vsyncadd [#allocation11], 4294967264 }
  0xed   :  { %207 = vsyncpa [#allocation5], 1 }
  0xee   :  { %208 = vsyncpa [#allocation8], 1 }
  0xef   :  { %209 = vsyncpa [#allocation6], 1 }
  0xf0   :  { %210 = vsyncpa [#allocation11], 1 }

</bundles_post_ra>
